<compile_context>
chip_gen: v5e
topology: v5e:2x2
jax: 0.10.0
libtpu: 0.0.40
codegen_flags: <defaults>
</compile_context>

<pallas_src>
import functools

import numpy as np
import jax
import jax.numpy as jnp
from jax.experimental import pallas as pl
from jax.experimental.pallas import tpu as pltpu

EPS = 1e-6
INV_SQRT2 = 0.7071067811865476


def _gelu_exact(x):
    # torch nn.GELU() default (exact, erf-based)
    return 0.5 * x * (1.0 + jax.lax.erf(x * INV_SQRT2))


def _interp_pad_matrix(L1, L_out):
    """Static (L1, L_out) matrix implementing nn.Upsample(scale_factor=2,
    mode='linear', align_corners=True) followed by F.pad to length L_out."""
    L_up = 2 * L1
    diff = L_out - L_up
    pad_left = diff // 2          # matches torch F.pad([diff//2, diff - diff//2])
    U = np.zeros((L1, L_out), np.float32)
    for j in range(L_out):
        u = j - pad_left
        if 0 <= u < L_up:
            src = 0.0 if L_up == 1 else u * (L1 - 1) / (L_up - 1)
            lo = int(np.floor(src))
            lo = min(max(lo, 0), L1 - 1)
            hi = min(lo + 1, L1 - 1)
            frac = src - lo
            U[lo, j] += 1.0 - frac
            U[hi, j] += frac
    return U


def _up_kernel(x1_ref, x2_ref, m_ref, u_ref,
               w1_ref, b1_ref, g1_ref, bt1_ref,
               w2_ref, b2_ref, g2_ref, bt2_ref,
               o_ref, *, Bt, L):
    # --- lane-flatten the batch tile: (Bt, C, L) -> (C, Bt*L) in VMEM ---------
    x1f = jnp.concatenate([x1_ref[i] for i in range(Bt)], axis=1)   # (C1, Bt*L1)
    x2f = jnp.concatenate([x2_ref[i] for i in range(Bt)], axis=1)   # (C2, Bt*L)
    mf = jnp.concatenate([m_ref[i] for i in range(Bt)], axis=1)     # (1,  Bt*L)

    # --- fused linear upsample (align_corners=True) + pad via MXU matmul ------
    x1u = jnp.dot(x1f.astype(jnp.float32), u_ref[...],
                  preferred_element_type=jnp.float32)               # (C1, Bt*L)
    # channel concat [x2, up(x1)] stays in VMEM (never round-trips HBM)
    x = jnp.concatenate([x2f.astype(jnp.float32), x1u], axis=0)     # (Cin, Bt*L)

    # --- boundary masks for 'same' conv, hoisted (shared by both convs) -------
    N = Bt * L
    lane = jax.lax.broadcasted_iota(jnp.int32, (1, N), 1)
    lmod = lane % L
    has_left = lmod >= 1          # h[:, l-1] valid inside its batch segment
    has_right = lmod <= L - 2     # h[:, l+1] valid inside its batch segment

    def shift_stack(h):
        # build [h(l-1); h(l); h(l+1)] -> single (3C, N) RHS for one matmul
        h_m1 = jnp.where(has_left, pltpu.roll(h, 1, axis=1), 0.0)
        h_p1 = jnp.where(has_right, pltpu.roll(h, N - 1, axis=1), 0.0)
        return jnp.concatenate([h_m1, h, h_p1], axis=0)

    def layer_norm(h, g_ref, b_ref):
        # torch-style: mean over channels, *unbiased* std (ddof=1), eps added to std
        C = h.shape[0]
        mean = jnp.mean(h, axis=0, keepdims=True)
        var = jnp.sum((h - mean) ** 2, axis=0, keepdims=True) / (C - 1)
        inv = pl.reciprocal(jnp.sqrt(var) + EPS)        # exact; EUP slot, not VALU
        return g_ref[...] * ((h - mean) * inv) + b_ref[...]

    # --- DoubleConv -----------------------------------------------------------
    h = jnp.dot(w1_ref[...], shift_stack(x),
                preferred_element_type=jnp.float32) + b1_ref[...]
    h = _gelu_exact(layer_norm(h, g1_ref, bt1_ref)) * mf
    h = jnp.dot(w2_ref[...], shift_stack(h),
                preferred_element_type=jnp.float32) + b2_ref[...]
    h = _gelu_exact(layer_norm(h, g2_ref, bt2_ref)) * mf

    # un-flatten back to (Bt, Cout, L)
    for i in range(Bt):
        o_ref[i] = h[:, i * L:(i + 1) * L].astype(o_ref.dtype)


def up_forward(x1, x2, mask, params, *, batch_tile=None):
    """x1: (B, C1, L1) decoder feature, x2: (B, C2, L) skip, mask: (B, 1, L)."""
    B, C1, L1 = x1.shape
    _, C2, L = x2.shape
    Cin = C1 + C2
    w1, b1, g1, beta1, w2, b2, g2, beta2 = params
    Cmid, Cout = w1.shape[0], w2.shape[0]

    # batch tile: largest divisor of B keeping Bt*L lanes modest (VMEM-friendly,
    # lane-dense matmuls/stores, amortizes per-grid-step overhead).
    if batch_tile is None:
        max_bt = max(1, 512 // max(L, 1))
        batch_tile = 1
        for d in range(1, B + 1):
            if B % d == 0 and d <= max_bt:
                batch_tile = d
    Bt = batch_tile
    assert B % Bt == 0, "batch_tile must divide B"

    # static block-diagonal upsample+pad matrix over the batch tile
    U = _interp_pad_matrix(L1, L)
    U_bd = np.zeros((Bt * L1, Bt * L), np.float32)
    for i in range(Bt):
        U_bd[i * L1:(i + 1) * L1, i * L:(i + 1) * L] = U
    U_bd = jnp.asarray(U_bd)

    # collapse the 3 conv taps: (Cout, Cin, 3) -> (Cout, 3*Cin), tap-major columns
    w1f = jnp.transpose(w1, (0, 2, 1)).reshape(Cmid, 3 * Cin)
    w2f = jnp.transpose(w2, (0, 2, 1)).reshape(Cout, 3 * Cmid)
    b1c, g1c, bt1c = b1.reshape(Cmid, 1), g1.reshape(Cmid, 1), beta1.reshape(Cmid, 1)
    b2c, g2c, bt2c = b2.reshape(Cout, 1), g2.reshape(Cout, 1), beta2.reshape(Cout, 1)

    def full(shape):
        return pl.BlockSpec(shape, lambda b, _n=len(shape): (0,) * _n)

    kernel = functools.partial(_up_kernel, Bt=Bt, L=L)

    return pl.pallas_call(
        kernel,
        out_shape=jax.ShapeDtypeStruct((B, Cout, L), x2.dtype),
        grid=(B // Bt,),
        in_specs=[
            pl.BlockSpec((Bt, C1, L1), lambda b: (b, 0, 0)),
            pl.BlockSpec((Bt, C2, L), lambda b: (b, 0, 0)),
            pl.BlockSpec((Bt, 1, L), lambda b: (b, 0, 0)),
            full((Bt * L1, Bt * L)),
            full((Cmid, 3 * Cin)), full((Cmid, 1)), full((Cmid, 1)), full((Cmid, 1)),
            full((Cout, 3 * Cmid)), full((Cout, 1)), full((Cout, 1)), full((Cout, 1)),
        ],
        out_specs=pl.BlockSpec((Bt, Cout, L), lambda b: (b, 0, 0)),
        compiler_params=pltpu.CompilerParams(dimension_semantics=("parallel",)),
    )(x1, x2, mask, U_bd, w1f, b1c, g1c, bt1c, w2f, b2c, g2c, bt2c)
    # TODO(synk): for very large L add an L-tile grid axis (halo via roll) so
    # v7x uses both TensorCores and the per-step block stays under 64 MiB VMEM.


# --- pure-JAX reference (independent path, for correctness check only) --------
def _upsample_pad_cat_ref(x1, x2):
    B, C1, L1 = x1.shape
    L_up = 2 * L1
    pos = jnp.arange(L_up, dtype=jnp.float32) * (L1 - 1) / (L_up - 1)
    lo = jnp.clip(jnp.floor(pos).astype(jnp.int32), 0, L1 - 1)
    hi = jnp.clip(lo + 1, 0, L1 - 1)
    frac = (pos - lo.astype(jnp.float32))[None, None, :]
    x1u = x1[..., lo] * (1.0 - frac) + x1[..., hi] * frac
    diffY = x2.shape[2] - x1u.shape[2]
    x1u = jnp.pad(x1u, ((0, 0), (0, 0), (diffY // 2, diffY - diffY // 2)))
    return jnp.concatenate([x2, x1u], axis=1)


def up_forward_ref(x1, x2, mask, params):
    x = _upsample_pad_cat_ref(x1, x2)
    w1, b1, g1, beta1, w2, b2, g2, beta2 = params

    def conv1d(h, w, b):
        y = jax.lax.conv_general_dilated(
            h, w, window_strides=(1,), padding=((1, 1),),
            dimension_numbers=('NCH', 'OIH', 'NCH'))
        return y + b[None, :, None]

    def ln(h, g, beta):
        C = h.shape[1]
        mean = h.mean(axis=1, keepdims=True)
        std = jnp.sqrt(((h - mean) ** 2).sum(axis=1, keepdims=True) / (C - 1))
        return g[None, :, None] * (h - mean) / (std + EPS) + beta[None, :, None]

    gelu = lambda t: 0.5 * t * (1.0 + jax.lax.erf(t * INV_SQRT2))
    h = gelu(ln(conv1d(x, w1, b1), g1, beta1)) * mask
    h = gelu(ln(conv1d(h, w2, b2), g2, beta2)) * mask
    return h


if __name__ == "__main__":
    key = jax.random.PRNGKey(0)
    B = 2
    in_channels, out_channels = 8, 4
    mid_channels = in_channels // 2          # DoubleConv(in, out, in // 2)
    C1 = in_channels // 2                    # channels of x1 (decoder feature)
    C2 = in_channels - C1                    # channels of x2 (skip connection)
    L1, L2 = 8, 16                           # up(x1): 8 -> 16 == len(x2)

    ks = jax.random.split(key, 8)
    x1 = jax.random.normal(ks[0], (B, C1, L1), jnp.float32)
    x2 = jax.random.normal(ks[1], (B, C2, L2), jnp.float32)
    mask = (jax.random.uniform(ks[2], (B, 1, L2)) < 0.8).astype(jnp.float32)

    # Deterministic synthetic parameters (shapes from the module's __init__).
    w1 = 0.3 * jax.random.normal(ks[3], (mid_channels, in_channels, 3), jnp.float32)
    b1 = 0.1 * jax.random.normal(ks[4], (mid_channels,), jnp.float32)
    g1 = jnp.ones((mid_channels,), jnp.float32)       # LayerNorm a_2 init
    beta1 = jnp.zeros((mid_channels,), jnp.float32)   # LayerNorm b_2 init
    w2 = 0.3 * jax.random.normal(ks[5], (out_channels, mid_channels, 3), jnp.float32)
    b2 = 0.1 * jax.random.normal(ks[6], (out_channels,), jnp.float32)
    g2 = jnp.ones((out_channels,), jnp.float32)
    beta2 = jnp.zeros((out_channels,), jnp.float32)
    params = (w1, b1, g1, beta1, w2, b2, g2, beta2)

    out = jax.block_until_ready(up_forward(x1, x2, mask, params))
    ref = up_forward_ref(x1, x2, mask, params)
    assert out.shape == (B, out_channels, L2)
    assert jnp.allclose(out, ref, atol=1e-5, rtol=1e-5), float(jnp.max(jnp.abs(out - ref)))
    print("KERNEL_OK")
</pallas_src>

<mosaic_0001>
module attributes {stable_mosaic.version = 11 : i64} {
  func.func @_up_kernel(%arg0: i32, %arg1: memref<2x4x8xf32, #tpu.memory_space<vmem>>, %arg2: memref<2x4x16xf32, #tpu.memory_space<vmem>>, %arg3: memref<2x1x16xf32, #tpu.memory_space<vmem>>, %arg4: memref<16x32xf32, #tpu.memory_space<vmem>>, %arg5: memref<4x24xf32, #tpu.memory_space<vmem>>, %arg6: memref<4x1xf32, #tpu.memory_space<vmem>>, %arg7: memref<4x1xf32, #tpu.memory_space<vmem>>, %arg8: memref<4x1xf32, #tpu.memory_space<vmem>>, %arg9: memref<4x12xf32, #tpu.memory_space<vmem>>, %arg10: memref<4x1xf32, #tpu.memory_space<vmem>>, %arg11: memref<4x1xf32, #tpu.memory_space<vmem>>, %arg12: memref<4x1xf32, #tpu.memory_space<vmem>>, %arg13: memref<2x4x16xf32, #tpu.memory_space<vmem>>) attributes {dimension_semantics = [#tpu.dimension_semantics<parallel>], iteration_bounds = array<i64: 1>, scalar_prefetch = 0 : i64, scratch_operands = 0 : i64, tpu.core_type = #tpu.core_type<tc>, window_params = [{transform_indices = @transform_0, window_bounds = array<i64: 2, 4, 8>}, {transform_indices = @transform_1, window_bounds = array<i64: 2, 4, 16>}, {transform_indices = @transform_2, window_bounds = array<i64: 2, 1, 16>}, {pipeline_mode = #tpu.pipeline_mode<synchronous>, transform_indices = @transform_3, window_bounds = array<i64: 16, 32>}, {pipeline_mode = #tpu.pipeline_mode<synchronous>, transform_indices = @transform_4, window_bounds = array<i64: 4, 24>}, {pipeline_mode = #tpu.pipeline_mode<synchronous>, transform_indices = @transform_5, window_bounds = array<i64: 4, 1>}, {pipeline_mode = #tpu.pipeline_mode<synchronous>, transform_indices = @transform_6, window_bounds = array<i64: 4, 1>}, {pipeline_mode = #tpu.pipeline_mode<synchronous>, transform_indices = @transform_7, window_bounds = array<i64: 4, 1>}, {pipeline_mode = #tpu.pipeline_mode<synchronous>, transform_indices = @transform_8, window_bounds = array<i64: 4, 12>}, {pipeline_mode = #tpu.pipeline_mode<synchronous>, transform_indices = @transform_9, window_bounds = array<i64: 4, 1>}, {pipeline_mode = #tpu.pipeline_mode<synchronous>, transform_indices = @transform_10, window_bounds = array<i64: 4, 1>}, {pipeline_mode = #tpu.pipeline_mode<synchronous>, transform_indices = @transform_11, window_bounds = array<i64: 4, 1>}, {transform_indices = @transform_12, window_bounds = array<i64: 2, 4, 16>}]} {
    %c0 = arith.constant 0 : index
    %c0_0 = arith.constant 0 : index
    %c0_1 = arith.constant 0 : index
    %0 = vector.load %arg1[%c0, %c0_0, %c0_1] : memref<2x4x8xf32, #tpu.memory_space<vmem>>, vector<1x4x8xf32>
    %1 = vector.shape_cast %0 : vector<1x4x8xf32> to vector<4x8xf32>
    %c1 = arith.constant 1 : index
    %c0_2 = arith.constant 0 : index
    %c0_3 = arith.constant 0 : index
    %2 = vector.load %arg1[%c1, %c0_2, %c0_3] : memref<2x4x8xf32, #tpu.memory_space<vmem>>, vector<1x4x8xf32>
    %3 = vector.shape_cast %2 : vector<1x4x8xf32> to vector<4x8xf32>
    %4 = tpu.concatenate %1, %3 in 1 : vector<4x8xf32>, vector<4x8xf32> -> vector<4x16xf32>
    %c0_4 = arith.constant 0 : index
    %c0_5 = arith.constant 0 : index
    %c0_6 = arith.constant 0 : index
    %5 = vector.load %arg2[%c0_4, %c0_5, %c0_6] : memref<2x4x16xf32, #tpu.memory_space<vmem>>, vector<1x4x16xf32>
    %6 = vector.shape_cast %5 : vector<1x4x16xf32> to vector<4x16xf32>
    %c1_7 = arith.constant 1 : index
    %c0_8 = arith.constant 0 : index
    %c0_9 = arith.constant 0 : index
    %7 = vector.load %arg2[%c1_7, %c0_8, %c0_9] : memref<2x4x16xf32, #tpu.memory_space<vmem>>, vector<1x4x16xf32>
    %8 = vector.shape_cast %7 : vector<1x4x16xf32> to vector<4x16xf32>
    %9 = tpu.concatenate %6, %8 in 1 : vector<4x16xf32>, vector<4x16xf32> -> vector<4x32xf32>
    %c0_10 = arith.constant 0 : index
    %c0_11 = arith.constant 0 : index
    %c0_12 = arith.constant 0 : index
    %10 = vector.load %arg3[%c0_10, %c0_11, %c0_12] : memref<2x1x16xf32, #tpu.memory_space<vmem>>, vector<1x1x16xf32>
    %11 = vector.shape_cast %10 : vector<1x1x16xf32> to vector<1x16xf32>
    %c1_13 = arith.constant 1 : index
    %c0_14 = arith.constant 0 : index
    %c0_15 = arith.constant 0 : index
    %12 = vector.load %arg3[%c1_13, %c0_14, %c0_15] : memref<2x1x16xf32, #tpu.memory_space<vmem>>, vector<1x1x16xf32>
    %13 = vector.shape_cast %12 : vector<1x1x16xf32> to vector<1x16xf32>
    %14 = tpu.concatenate %11, %13 in 1 : vector<1x16xf32>, vector<1x16xf32> -> vector<1x32xf32>
    %c0_16 = arith.constant 0 : index
    %c0_17 = arith.constant 0 : index
    %15 = vector.load %arg4[%c0_16, %c0_17] : memref<16x32xf32, #tpu.memory_space<vmem>>, vector<16x32xf32>
    %cst = arith.constant dense<0.000000e+00> : vector<4x32xf32>
    %16 = tpu.matmul %4, %15, %cst {dimension_numbers = #tpu.dot_dimension_numbers<[1], [0], [0], [1], [0, 0, 1, 1], [], []>} : vector<4x16xf32>, vector<16x32xf32>, vector<4x32xf32> -> vector<4x32xf32>
    %17 = tpu.concatenate %9, %16 in 0 : vector<4x32xf32>, vector<4x32xf32> -> vector<8x32xf32>
    %18 = tpu.iota {dimensions = array<i32: 1>} : vector<1x32xi32>
    %c16_i32 = arith.constant 16 : i32
    %c0_i32 = arith.constant 0 : i32
    %19 = arith.cmpi eq, %c16_i32, %c0_i32 : i32
    %c1_i32 = arith.constant 1 : i32
    %20 = arith.select %19, %c1_i32, %c16_i32 : i32
    %21 = vector.broadcast %20 : i32 to vector<1x32xi32>
    %22 = arith.remsi %18, %21 : vector<1x32xi32>
    %c0_i32_18 = arith.constant 0 : i32
    %23 = vector.broadcast %c0_i32_18 : i32 to vector<1x32xi32>
    %24 = arith.cmpi ne, %22, %23 : vector<1x32xi32>
    %c0_i32_19 = arith.constant 0 : i32
    %25 = vector.broadcast %c0_i32_19 : i32 to vector<1x32xi32>
    %26 = arith.cmpi slt, %22, %25 : vector<1x32xi32>
    %c0_i32_20 = arith.constant 0 : i32
    %27 = arith.cmpi slt, %20, %c0_i32_20 : i32
    %28 = vector.broadcast %27 : i1 to vector<1x32xi1>
    %29 = vector.broadcast %28 : vector<1x32xi1> to vector<1x32xi1>
    %30 = arith.xori %26, %29 : vector<1x32xi1>
    %31 = arith.andi %30, %24 : vector<1x32xi1>
    %32 = vector.broadcast %20 : i32 to vector<1x32xi32>
    %33 = arith.addi %22, %32 : vector<1x32xi32>
    %34 = arith.select %31, %33, %22 : vector<1x32xi1>, vector<1x32xi32>
    %c1_i32_21 = arith.constant 1 : i32
    %35 = vector.broadcast %c1_i32_21 : i32 to vector<1x32xi32>
    %36 = arith.cmpi sge, %34, %35 : vector<1x32xi32>
    %c14_i32 = arith.constant 14 : i32
    %37 = vector.broadcast %c14_i32 : i32 to vector<1x32xi32>
    %38 = arith.cmpi sle, %34, %37 : vector<1x32xi32>
    %c0_22 = arith.constant 0 : index
    %c0_23 = arith.constant 0 : index
    %39 = vector.load %arg5[%c0_22, %c0_23] : memref<4x24xf32, #tpu.memory_space<vmem>>, vector<4x24xf32>
    %c1_i32_24 = arith.constant 1 : i32
    %40 = tpu.dynamic_rotate %17 by %c1_i32_24 dim 1 : vector<8x32xf32>, i32 -> vector<8x32xf32>
    %cst_25 = arith.constant 0.000000e+00 : f32
    %41 = vector.shape_cast %36 : vector<1x32xi1> to vector<1x32xi1>
    %42 = vector.broadcast %41 : vector<1x32xi1> to vector<8x32xi1>
    %43 = vector.broadcast %cst_25 : f32 to vector<8x32xf32>
    %44 = arith.select %42, %40, %43 : vector<8x32xi1>, vector<8x32xf32>
    %c31_i32 = arith.constant 31 : i32
    %45 = tpu.dynamic_rotate %17 by %c31_i32 dim 1 : vector<8x32xf32>, i32 -> vector<8x32xf32>
    %cst_26 = arith.constant 0.000000e+00 : f32
    %46 = vector.shape_cast %38 : vector<1x32xi1> to vector<1x32xi1>
    %47 = vector.broadcast %46 : vector<1x32xi1> to vector<8x32xi1>
    %48 = vector.broadcast %cst_26 : f32 to vector<8x32xf32>
    %49 = arith.select %47, %45, %48 : vector<8x32xi1>, vector<8x32xf32>
    %50 = tpu.concatenate %44, %17, %49 in 0 : vector<8x32xf32>, vector<8x32xf32>, vector<8x32xf32> -> vector<24x32xf32>
    %cst_27 = arith.constant dense<0.000000e+00> : vector<4x32xf32>
    %51 = tpu.matmul %39, %50, %cst_27 {dimension_numbers = #tpu.dot_dimension_numbers<[1], [0], [0], [1], [0, 0, 1, 1], [], []>} : vector<4x24xf32>, vector<24x32xf32>, vector<4x32xf32> -> vector<4x32xf32>
    %c0_28 = arith.constant 0 : index
    %c0_29 = arith.constant 0 : index
    %52 = vector.load %arg6[%c0_28, %c0_29] : memref<4x1xf32, #tpu.memory_space<vmem>>, vector<4x1xf32>
    %53 = vector.broadcast %52 : vector<4x1xf32> to vector<4x32xf32>
    %54 = arith.addf %51, %53 : vector<4x32xf32>
    %cst_30 = arith.constant dense<0.000000e+00> : vector<32xf32>
    %55 = vector.multi_reduction <add>, %54, %cst_30 [0] : vector<4x32xf32> to vector<32xf32>
    %56 = vector.shape_cast %55 : vector<32xf32> to vector<1x32xf32>
    %cst_31 = arith.constant 4.000000e+00 : f32
    %57 = vector.broadcast %cst_31 : f32 to vector<1x32xf32>
    %58 = arith.divf %56, %57 : vector<1x32xf32>
    %59 = vector.broadcast %58 : vector<1x32xf32> to vector<4x32xf32>
    %60 = arith.subf %54, %59 : vector<4x32xf32>
    %61 = arith.mulf %60, %60 : vector<4x32xf32>
    %cst_32 = arith.constant dense<0.000000e+00> : vector<32xf32>
    %62 = vector.multi_reduction <add>, %61, %cst_32 [0] : vector<4x32xf32> to vector<32xf32>
    %63 = vector.shape_cast %62 : vector<32xf32> to vector<1x32xf32>
    %cst_33 = arith.constant 3.000000e+00 : f32
    %64 = vector.broadcast %cst_33 : f32 to vector<1x32xf32>
    %65 = arith.divf %63, %64 : vector<1x32xf32>
    %66 = math.sqrt %65 : vector<1x32xf32>
    %cst_34 = arith.constant 9.99999997E-7 : f32
    %67 = vector.broadcast %cst_34 : f32 to vector<1x32xf32>
    %68 = arith.addf %66, %67 : vector<1x32xf32>
    %69 = tpu.reciprocal %68 : vector<1x32xf32> -> vector<1x32xf32>
    %c0_35 = arith.constant 0 : index
    %c0_36 = arith.constant 0 : index
    %70 = vector.load %arg7[%c0_35, %c0_36] : memref<4x1xf32, #tpu.memory_space<vmem>>, vector<4x1xf32>
    %71 = vector.broadcast %58 : vector<1x32xf32> to vector<4x32xf32>
    %72 = arith.subf %54, %71 : vector<4x32xf32>
    %73 = vector.broadcast %69 : vector<1x32xf32> to vector<4x32xf32>
    %74 = arith.mulf %72, %73 : vector<4x32xf32>
    %75 = vector.broadcast %70 : vector<4x1xf32> to vector<4x32xf32>
    %76 = arith.mulf %75, %74 : vector<4x32xf32>
    %c0_37 = arith.constant 0 : index
    %c0_38 = arith.constant 0 : index
    %77 = vector.load %arg8[%c0_37, %c0_38] : memref<4x1xf32, #tpu.memory_space<vmem>>, vector<4x1xf32>
    %78 = vector.broadcast %77 : vector<4x1xf32> to vector<4x32xf32>
    %79 = arith.addf %76, %78 : vector<4x32xf32>
    %cst_39 = arith.constant 5.000000e-01 : f32
    %80 = vector.broadcast %cst_39 : f32 to vector<4x32xf32>
    %81 = arith.mulf %80, %79 : vector<4x32xf32>
    %cst_40 = arith.constant 0.707106769 : f32
    %82 = vector.broadcast %cst_40 : f32 to vector<4x32xf32>
    %83 = arith.mulf %79, %82 : vector<4x32xf32>
    %84 = math.erf %83 : vector<4x32xf32>
    %cst_41 = arith.constant 1.000000e+00 : f32
    %85 = vector.broadcast %cst_41 : f32 to vector<4x32xf32>
    %86 = arith.addf %85, %84 : vector<4x32xf32>
    %87 = arith.mulf %81, %86 : vector<4x32xf32>
    %88 = vector.broadcast %14 : vector<1x32xf32> to vector<4x32xf32>
    %89 = arith.mulf %87, %88 : vector<4x32xf32>
    %c0_42 = arith.constant 0 : index
    %c0_43 = arith.constant 0 : index
    %90 = vector.load %arg9[%c0_42, %c0_43] : memref<4x12xf32, #tpu.memory_space<vmem>>, vector<4x12xf32>
    %c1_i32_44 = arith.constant 1 : i32
    %91 = tpu.dynamic_rotate %89 by %c1_i32_44 dim 1 : vector<4x32xf32>, i32 -> vector<4x32xf32>
    %cst_45 = arith.constant 0.000000e+00 : f32
    %92 = vector.shape_cast %36 : vector<1x32xi1> to vector<1x32xi1>
    %93 = vector.broadcast %92 : vector<1x32xi1> to vector<4x32xi1>
    %94 = vector.broadcast %cst_45 : f32 to vector<4x32xf32>
    %95 = arith.select %93, %91, %94 : vector<4x32xi1>, vector<4x32xf32>
    %c31_i32_46 = arith.constant 31 : i32
    %96 = tpu.dynamic_rotate %89 by %c31_i32_46 dim 1 : vector<4x32xf32>, i32 -> vector<4x32xf32>
    %cst_47 = arith.constant 0.000000e+00 : f32
    %97 = vector.shape_cast %38 : vector<1x32xi1> to vector<1x32xi1>
    %98 = vector.broadcast %97 : vector<1x32xi1> to vector<4x32xi1>
    %99 = vector.broadcast %cst_47 : f32 to vector<4x32xf32>
    %100 = arith.select %98, %96, %99 : vector<4x32xi1>, vector<4x32xf32>
    %101 = tpu.concatenate %95, %89, %100 in 0 : vector<4x32xf32>, vector<4x32xf32>, vector<4x32xf32> -> vector<12x32xf32>
    %cst_48 = arith.constant dense<0.000000e+00> : vector<4x32xf32>
    %102 = tpu.matmul %90, %101, %cst_48 {dimension_numbers = #tpu.dot_dimension_numbers<[1], [0], [0], [1], [0, 0, 1, 1], [], []>} : vector<4x12xf32>, vector<12x32xf32>, vector<4x32xf32> -> vector<4x32xf32>
    %c0_49 = arith.constant 0 : index
    %c0_50 = arith.constant 0 : index
    %103 = vector.load %arg10[%c0_49, %c0_50] : memref<4x1xf32, #tpu.memory_space<vmem>>, vector<4x1xf32>
    %104 = vector.broadcast %103 : vector<4x1xf32> to vector<4x32xf32>
    %105 = arith.addf %102, %104 : vector<4x32xf32>
    %cst_51 = arith.constant dense<0.000000e+00> : vector<32xf32>
    %106 = vector.multi_reduction <add>, %105, %cst_51 [0] : vector<4x32xf32> to vector<32xf32>
    %107 = vector.shape_cast %106 : vector<32xf32> to vector<1x32xf32>
    %cst_52 = arith.constant 4.000000e+00 : f32
    %108 = vector.broadcast %cst_52 : f32 to vector<1x32xf32>
    %109 = arith.divf %107, %108 : vector<1x32xf32>
    %110 = vector.broadcast %109 : vector<1x32xf32> to vector<4x32xf32>
    %111 = arith.subf %105, %110 : vector<4x32xf32>
    %112 = arith.mulf %111, %111 : vector<4x32xf32>
    %cst_53 = arith.constant dense<0.000000e+00> : vector<32xf32>
    %113 = vector.multi_reduction <add>, %112, %cst_53 [0] : vector<4x32xf32> to vector<32xf32>
    %114 = vector.shape_cast %113 : vector<32xf32> to vector<1x32xf32>
    %cst_54 = arith.constant 3.000000e+00 : f32
    %115 = vector.broadcast %cst_54 : f32 to vector<1x32xf32>
    %116 = arith.divf %114, %115 : vector<1x32xf32>
    %117 = math.sqrt %116 : vector<1x32xf32>
    %cst_55 = arith.constant 9.99999997E-7 : f32
    %118 = vector.broadcast %cst_55 : f32 to vector<1x32xf32>
    %119 = arith.addf %117, %118 : vector<1x32xf32>
    %120 = tpu.reciprocal %119 : vector<1x32xf32> -> vector<1x32xf32>
    %c0_56 = arith.constant 0 : index
    %c0_57 = arith.constant 0 : index
    %121 = vector.load %arg11[%c0_56, %c0_57] : memref<4x1xf32, #tpu.memory_space<vmem>>, vector<4x1xf32>
    %122 = vector.broadcast %109 : vector<1x32xf32> to vector<4x32xf32>
    %123 = arith.subf %105, %122 : vector<4x32xf32>
    %124 = vector.broadcast %120 : vector<1x32xf32> to vector<4x32xf32>
    %125 = arith.mulf %123, %124 : vector<4x32xf32>
    %126 = vector.broadcast %121 : vector<4x1xf32> to vector<4x32xf32>
    %127 = arith.mulf %126, %125 : vector<4x32xf32>
    %c0_58 = arith.constant 0 : index
    %c0_59 = arith.constant 0 : index
    %128 = vector.load %arg12[%c0_58, %c0_59] : memref<4x1xf32, #tpu.memory_space<vmem>>, vector<4x1xf32>
    %129 = vector.broadcast %128 : vector<4x1xf32> to vector<4x32xf32>
    %130 = arith.addf %127, %129 : vector<4x32xf32>
    %cst_60 = arith.constant 5.000000e-01 : f32
    %131 = vector.broadcast %cst_60 : f32 to vector<4x32xf32>
    %132 = arith.mulf %131, %130 : vector<4x32xf32>
    %cst_61 = arith.constant 0.707106769 : f32
    %133 = vector.broadcast %cst_61 : f32 to vector<4x32xf32>
    %134 = arith.mulf %130, %133 : vector<4x32xf32>
    %135 = math.erf %134 : vector<4x32xf32>
    %cst_62 = arith.constant 1.000000e+00 : f32
    %136 = vector.broadcast %cst_62 : f32 to vector<4x32xf32>
    %137 = arith.addf %136, %135 : vector<4x32xf32>
    %138 = arith.mulf %132, %137 : vector<4x32xf32>
    %139 = vector.broadcast %14 : vector<1x32xf32> to vector<4x32xf32>
    %140 = arith.mulf %138, %139 : vector<4x32xf32>
    %141 = vector.extract_strided_slice %140 {offsets = [0, 0], sizes = [4, 16], strides = [1, 1]} : vector<4x32xf32> to vector<4x16xf32>
    %c0_63 = arith.constant 0 : index
    %c0_64 = arith.constant 0 : index
    %c0_65 = arith.constant 0 : index
    %142 = vector.load %arg13[%c0_63, %c0_64, %c0_65] : memref<2x4x16xf32, #tpu.memory_space<vmem>>, vector<1x4x16xf32>
    %143 = vector.shape_cast %142 : vector<1x4x16xf32> to vector<4x16xf32>
    %144 = vector.shape_cast %141 : vector<4x16xf32> to vector<1x4x16xf32>
    tpu.vector_store %arg13[%c0_63, %c0_64, %c0_65], %144 {strides = array<i32>} : memref<2x4x16xf32, #tpu.memory_space<vmem>>, vector<1x4x16xf32>,
    %145 = vector.extract_strided_slice %140 {offsets = [0, 16], sizes = [4, 16], strides = [1, 1]} : vector<4x32xf32> to vector<4x16xf32>
    %c1_66 = arith.constant 1 : index
    %c0_67 = arith.constant 0 : index
    %c0_68 = arith.constant 0 : index
    %146 = vector.load %arg13[%c1_66, %c0_67, %c0_68] : memref<2x4x16xf32, #tpu.memory_space<vmem>>, vector<1x4x16xf32>
    %147 = vector.shape_cast %146 : vector<1x4x16xf32> to vector<4x16xf32>
    %148 = vector.shape_cast %145 : vector<4x16xf32> to vector<1x4x16xf32>
    tpu.vector_store %arg13[%c1_66, %c0_67, %c0_68], %148 {strides = array<i32>} : memref<2x4x16xf32, #tpu.memory_space<vmem>>, vector<1x4x16xf32>,
    return
  }
  func.func @transform_0(%arg0: i32) -> (i32, i32, i32) {
    %c0_i32 = arith.constant 0 : i32
    %c0_i32_0 = arith.constant 0 : i32
    %c0_i32_1 = arith.constant 0 : i32
    return %arg0, %c0_i32, %c0_i32_0 : i32, i32, i32
  }
  func.func @transform_1(%arg0: i32) -> (i32, i32, i32) {
    %c0_i32 = arith.constant 0 : i32
    %c0_i32_0 = arith.constant 0 : i32
    %c0_i32_1 = arith.constant 0 : i32
    return %arg0, %c0_i32, %c0_i32_0 : i32, i32, i32
  }
  func.func @transform_2(%arg0: i32) -> (i32, i32, i32) {
    %c0_i32 = arith.constant 0 : i32
    %c0_i32_0 = arith.constant 0 : i32
    %c0_i32_1 = arith.constant 0 : i32
    return %arg0, %c0_i32, %c0_i32_0 : i32, i32, i32
  }
  func.func @transform_3(%arg0: i32) -> (i32, i32) {
    %c0_i32 = arith.constant 0 : i32
    %c0_i32_0 = arith.constant 0 : i32
    %c0_i32_1 = arith.constant 0 : i32
    return %c0_i32, %c0_i32_0 : i32, i32
  }
  func.func @transform_4(%arg0: i32) -> (i32, i32) {
    %c0_i32 = arith.constant 0 : i32
    %c0_i32_0 = arith.constant 0 : i32
    %c0_i32_1 = arith.constant 0 : i32
    return %c0_i32, %c0_i32_0 : i32, i32
  }
  func.func @transform_5(%arg0: i32) -> (i32, i32) {
    %c0_i32 = arith.constant 0 : i32
    %c0_i32_0 = arith.constant 0 : i32
    %c0_i32_1 = arith.constant 0 : i32
    return %c0_i32, %c0_i32_0 : i32, i32
  }
  func.func @transform_6(%arg0: i32) -> (i32, i32) {
    %c0_i32 = arith.constant 0 : i32
    %c0_i32_0 = arith.constant 0 : i32
    %c0_i32_1 = arith.constant 0 : i32
    return %c0_i32, %c0_i32_0 : i32, i32
  }
  func.func @transform_7(%arg0: i32) -> (i32, i32) {
    %c0_i32 = arith.constant 0 : i32
    %c0_i32_0 = arith.constant 0 : i32
    %c0_i32_1 = arith.constant 0 : i32
    return %c0_i32, %c0_i32_0 : i32, i32
  }
  func.func @transform_8(%arg0: i32) -> (i32, i32) {
    %c0_i32 = arith.constant 0 : i32
    %c0_i32_0 = arith.constant 0 : i32
    %c0_i32_1 = arith.constant 0 : i32
    return %c0_i32, %c0_i32_0 : i32, i32
  }
  func.func @transform_9(%arg0: i32) -> (i32, i32) {
    %c0_i32 = arith.constant 0 : i32
    %c0_i32_0 = arith.constant 0 : i32
    %c0_i32_1 = arith.constant 0 : i32
    return %c0_i32, %c0_i32_0 : i32, i32
  }
  func.func @transform_10(%arg0: i32) -> (i32, i32) {
    %c0_i32 = arith.constant 0 : i32
    %c0_i32_0 = arith.constant 0 : i32
    %c0_i32_1 = arith.constant 0 : i32
    return %c0_i32, %c0_i32_0 : i32, i32
  }
  func.func @transform_11(%arg0: i32) -> (i32, i32) {
    %c0_i32 = arith.constant 0 : i32
    %c0_i32_0 = arith.constant 0 : i32
    %c0_i32_1 = arith.constant 0 : i32
    return %c0_i32, %c0_i32_0 : i32, i32
  }
  func.func @transform_12(%arg0: i32) -> (i32, i32, i32) {
    %c0_i32 = arith.constant 0 : i32
    %c0_i32_0 = arith.constant 0 : i32
    %c0_i32_1 = arith.constant 0 : i32
    return %arg0, %c0_i32, %c0_i32_0 : i32, i32, i32
  }
}

</mosaic_0001>

<bundles_post_ra>
// kernel: tpu_custom_call.1
= control target key start
LH: loop header
LB: loop body
LE: loop exit
PB: predicated region body
PF: predicated region fallthrough
CT: control target
= control target key end

     0   :  { %17 = vsyncpa [#allocation3], 0  ;;  %s814_s0 = inlined_call_operand.vmem [shape: f32[2,4,8], index: 0, kind: input, shape index: {}]   ;;  %s815_s1 = inlined_call_operand.hbm [shape: f32[2,4,16], index: 1, kind: input, shape index: {}]   ;;  %s816_s2 = inlined_call_operand.vmem [shape: f32[2,1,16], index: 2, kind: input, shape index: {}]   ;;  %s817_s3 = inlined_call_operand.hbm [shape: f32[16,32], index: 3, kind: input, shape index: {}]   ;;  %s818_s4 = inlined_call_operand.vmem [shape: f32[4,24], index: 4, kind: input, shape index: {}]   ;;  %s819_s5 = inlined_call_operand.vmem [shape: f32[4,1], index: 5, kind: input, shape index: {}]   ;;  %s820_s6 = inlined_call_operand.vmem [shape: f32[4,1], index: 6, kind: input, shape index: {}]   ;;  %s821_s7 = inlined_call_operand.vmem [shape: f32[4,1], index: 7, kind: input, shape index: {}]   ;;  %s822_s8 = inlined_call_operand.vmem [shape: f32[4,12], index: 8, kind: input, shape index: {}]   ;;  %s823_s9 = inlined_call_operand.vmem [shape: f32[4,1], index: 9, kind: input, shape index: {}]   ;;  %s824_s10 = inlined_call_operand.vmem [shape: f32[4,1], index: 10, kind: input, shape index: {}]   ;;  %s825_s11 = inlined_call_operand.vmem [shape: f32[4,1], index: 11, kind: input, shape index: {}]   ;;  %s826_s12 = inlined_call_operand.hbm [shape: f32[2,4,16], index: 12, kind: output, shape index: {}]  }
   0x1   :  { %18 = vsyncpa [#allocation6], 0 }
   0x2   :  { %19 = vsyncpa [#allocation4], 0  ;;  %s26_s23 = sshll.u32 %s815_s1, 4  ;;  %s628_s24 = smov [#allocation2]   ;;  %s27_s23 = int_to_ptr.hbm [resolvable:$true] %s26_s23 }
   0x3   :  { %s28_s25 = sshll.u32 %s628_s24, 4  ;;  %s41_s28 = sshll.u32 %s817_s3, 4  ;;  %s29_s25 = int_to_ptr.vmem [resolvable:$true] %s28_s25  ;;  %s42_s28 = int_to_ptr.hbm [resolvable:$true] %s41_s28 }
   0x4   :  { %s629_s29 = smov 64   ;;  %s630_s30 = smov 4  }
   0x5   :  { %34 = dma.hbm_to_vmem [thread:$0]  %s27_s23, 128, %s29_s25, [#allocation3], %s629_s29, %s629_s29, %s630_s30  }
   0x6   :  { %s631_s13 = smov [#allocation5]   ;;  %s632_s15 = smov 128  }
   0x7   :  { %s43_s14 = sshll.u32 %s631_s13, 4  ;;  %s633_s1 = smov 8   ;;  %s44_s14 = int_to_ptr.vmem [resolvable:$true] %s43_s14 }
   0x8   :  { %49 = dma.hbm_to_vmem [thread:$0]  %s42_s28, 256, %s44_s14, [#allocation6], %s632_s15, %s632_s15, %s633_s1  }
   0x9   :  { %622 = dma.done.wait [#allocation3], 128  }
   0xa   :  { %623 = vsyncadd [#allocation3], 4294967168 }
   0xb   :  { %624 = dma.done.wait [#allocation6], 256  }
   0xc   :  { %625 = vsyncadd [#allocation6], 4294967040  ;;  %v505_v0 = vld [vmem:[%s814_s0 + $0x4] sm:$0xf]  ;;  %v102_v1 = vld [vmem:[#allocation5 + $0x8] sm:$0xff]  ;;  %s634_s3 = smov 16   ;;  %v131_v21 = vlaneseq }
   0xd   :  { %78 = vrot.lane.b32.xlu0 %v505_v0, %s633_s1  ;;  %120 = vmatpush.msra.mxu0 %v102_v1  ;;  %v101_v2 = vld [vmem:[#allocation5] sm:$0xff]  ;;  %v85_v3 = vld [vmem:[#allocation2 + $0x4] sm:$0xf]  ;;  %v74_v4 = vld [vmem:[%s814_s0] sm:$0xf]  ;;  %vm81_vm0 = vcmask 64512  }
   0xe   :  { %vm90_vm1 = vcmask 130048   ;;  %v83_v7 = vld [vmem:[#allocation2] sm:$0xf]  ;;  %vm129_vm2 = vcmask 1043456   ;;  %s635_s20 = smov 32   ;;  %vm148_vm3 = vcmask 1047808  }
   0xf   :  { %121 = vmatpush.msra.mxu0 %v101_v2  ;;  %s636_s0 = smov 127   ;;  %s637_s21 = smov 97   ;;  %v168_v17 = vld [vmem:[%s819_s5] sm:$0xf]  ;;  %v638_v19 = vmov 0   ;;  %v132_v22 = vand.u32 127, %v131_v21 }
  0x10   :  { %v258_v18 = vld [vmem:[%s820_s6] sm:$0xf]  ;;  %530 = vset.pattern.permute.xlu0 %v638_v19  ;;  %531 = vset.pattern.permute.xlu1 %v638_v19  ;;  %vm174_vm6 = vcmask 195584   ;;  %v639_v30 = vmov 4.0   ;;  %vm198_vm7 = vcmask 257024   ;;  %v640_v41 = vmov 3.0  }
  0x11   :  { %v266_v20 = vld [vmem:[%s821_s7] sm:$0xf]  ;;  %532 = vset.pattern.permute.xlu2 %v638_v19  ;;  %v137_v23 = vand.u32 15, %v132_v22  ;;  %534 = vrcp.f32 %v639_v30 }
  0x12   :  { %v147_v27 = vld [vmem:[%s818_s4] sm:$0xf]  ;;  %536 = vrcp.f32 %v640_v41 }
  0x13   :  { %vm742_vm4 = vcmp.le.s32.totalorder %v137_v23, 14  ;;  %vm748_vm5 = vcmp.ge.s32.totalorder %v137_v23, 1  ;;  %v533_v29 = vld [vmem:[%s816_s2 + $0x1] ss:$0 sm:$0xff] }
  0x15   :  { %87 = vrot.lane.b32.xlu0 %v85_v3, %s634_s3 }
  0x17   :  { %v535_v31 = vpop.eup %534 }
  0x18   :  { %v207_v32 = vmul.f32 4.0, %v535_v31  ;;  %vm211_vm8 = vweird.f32 %v535_v31  ;;  %v537_v46 = vpop.eup %536 }
  0x19   :  { %v224_v50 = vmul.f32 3.0, %v537_v46  ;;  %vm228_vm9 = vweird.f32 %v537_v46 }
  0x1a   :  { %v208_v36 = vsub.f32 1.0, %v207_v32 }
  0x1b   :  { %v225_v53 = vsub.f32 1.0, %v224_v50 }
  0x1c   :  { %v209_v39 = vmul.f32 %v535_v31, %v208_v36 }
  0x1d   :  { %171 = vperm.xlu0 %530, %v168_v17   ;;  %v226_v56 = vmul.f32 %v537_v46, %v225_v53 }
  0x1e   :  { %v210_v43 = vadd.f32 %v535_v31, %v209_v39 }
  0x1f   :  { %v227_v59 = vadd.f32 %v537_v46, %v226_v56 }
  0x20   :  { %v762_v47 = vsel %vm211_vm8, %v535_v31, %v210_v43 }
  0x21   :  { %v766_v62 = vsel %vm228_vm9, %v537_v46, %v227_v59 }
  0x7f   :  { %v79_v5 = vpop.permute.xlu0 %78 }
  0x80   :  { %v82_v6 = vsel %vm81_vm0, %v74_v4, %v79_v5 }
  0x81   :  { %507 = vmatmul.msk.f32.vlgmr.msra.gmra.mxu0 %vm90_vm1, %v82_v6 }
  0x87   :  { %v88_v8 = vpop.permute.xlu0 %87 }
  0x88   :  { %v91_v10 = vsel %vm90_vm1, %v83_v7, %v88_v8 }
  0x8f   :  { %v172_v33 = vpop.permute.xlu0 %171 }
  0xfe   :  { %v123_v9 = vpop.f32.mrf.mxu0 }
  0xff   :  { %v127_v11 = vrot.slane %v123_v9, 4 }
 0x101   :  { %v130_v12 = vsel %vm129_vm2, %v91_v10, %v127_v11 }
 0x102   :  { %149 = vrot.lane.b32.xlu1 %v130_v12, %s635_s20 }
 0x174   :  { %v150_v13 = vpop.permute.xlu1 %149 }
 0x175   :  { %v151_v14 = vsel %vm148_vm3, %v150_v13, %v130_v12 }
 0x176   :  { %152 = vrot.lane.b32.xlu1 %v151_v14, %s635_s20 }
 0x17e   :  { %262 = vperm.xlu1 %531, %v258_v18  }
 0x186   :  { %97 = vrot.lane.b32.xlu1 %v533_v29, %s634_s3 }
 0x1e8   :  { %v153_v15 = vpop.permute.xlu1 %152 }
 0x1e9   :  { %v154_v16 = vsel %vm148_vm3, %v153_v15, %v130_v12 }
 0x1ea   :  { %164 = vrot.lane.b32.xlu2 %v154_v16, %s636_s0 }
 0x1f0   :  { %v263_v22 = vpop.permute.xlu1 %262 }
 0x1f2   :  { %158 = vrot.lane.b32.xlu2 %v154_v16, %s637_s21 }
 0x1fa   :  { %269 = vperm.xlu2 %532, %v266_v20  }
 0x244   :  { %v165_v25 = vpop.permute.xlu2 %164 }
 0x245   :  { %508 = vmatpush.msk.msra.mxu1 %vm742_vm4, %v165_v25 }
 0x247   :  { %192 = vmatpush.msra.mxu1 %v130_v12 }
 0x24c   :  { %v159_v28 = vpop.permute.xlu2 %158 }
 0x24d   :  { %509 = vmatpush.msk.msra.mxu1 %vm748_vm5, %v159_v28 }
 0x24e   :  { %510 = vmatmul.msk.f32.vlgmr.msra.gmra.mxu1 %vm174_vm6, %v147_v27 }
 0x254   :  { %v270_v25 = vpop.permute.xlu2 %269 }
 0x2cb   :  { %v195_v34 = vpop.f32.mrf.mxu1 }
 0x2cc   :  { %v196_v35 = vadd.f32 %v195_v34, %v172_v33 }
 0x2ce   :  { %v199_v37 = vsel %vm198_vm7, %v196_v35, 0.0 }
 0x2cf   :  { %v200_v38 = vrot.slane %v199_v37, 4 }
 0x2d1   :  { %v201_v40 = vadd.f32 %v200_v38, %v199_v37 }
 0x2d3   :  { %v202_v42 = vrot.slane %v201_v40, 2 }
 0x2d5   :  { %v203_v44 = vadd.f32 %v202_v42, %v201_v40 }
 0x2d7   :  { %v204_v45 = vrot.slane %v203_v44, 1 }
 0x2d9   :  { %v205_v48 = vadd.f32 %v204_v45, %v203_v44 }
 0x2db   :  { %v213_v49 = vmul.f32 %v762_v47, %v205_v48 }
 0x2dd   :  { %v214_v51 = vsub.f32 %v196_v35, %v213_v49 }
 0x2df   :  { %v215_v52 = vmul.f32 %v214_v51, %v214_v51 }
 0x2e1   :  { %v216_v54 = vsel %vm198_vm7, %v215_v52, 0.0 }
 0x2e2   :  { %v217_v55 = vrot.slane %v216_v54, 4 }
 0x2e4   :  { %v218_v57 = vadd.f32 %v217_v55, %v216_v54 }
 0x2e6   :  { %v219_v58 = vrot.slane %v218_v57, 2 }
 0x2e8   :  { %v220_v60 = vadd.f32 %v219_v58, %v218_v57 }
 0x2ea   :  { %v221_v61 = vrot.slane %v220_v60, 1 }
 0x2ec   :  { %v222_v63 = vadd.f32 %v221_v61, %v220_v60 }
 0x2ee   :  { %v230_v0 = vmul.f32 %v766_v62, %v222_v63 }
 0x2f0   :  { %538 = vrsqrt.f32 %v230_v0  ;;  %vm238_vm10 = vcmp.eq.f32.partialorder %v230_v0, inf  ;;  %v241_v8 = vand.u32 2147483648, %v230_v0  ;;  %vm240_vm11 = vcmp.eq.f32.partialorder %v230_v0, 0.0 }
 0x2f6   :  { %v539_v1 = vpop.eup %538 }
 0x2f7   :  { %v232_v2 = vmul.f32 %v539_v1, %v230_v0 }
 0x2f9   :  { %v233_v3 = vmul.f32 %v539_v1, %v232_v2 }
 0x2fb   :  { %v234_v4 = vmul.f32 0.5, %v233_v3 }
 0x2fd   :  { %v235_v5 = vsub.f32 1.5, %v234_v4 }
 0x2ff   :  { %v236_v6 = vmul.f32 %v539_v1, %v235_v5  ;;  %v98_v1 = vpop.permute.xlu1 %97 }
 0x301   :  { %v237_v7 = vmul.f32 %v236_v6, %v230_v0 }
 0x303   :  { %v239_v9 = vsel %vm238_vm10, %v230_v0, %v237_v7  ;;  %v92_v0 = vld [vmem:[%s816_s2] sm:$0x1] }
 0x304   :  { %v242_v10 = vsel %vm240_vm11, %v241_v8, %v239_v9  ;;  %v773_v4 = vsel %vm90_vm1, %v92_v0, %v98_v1  ;;  %vm345_vm1 = vcmask 97280  }
 0x305   :  { %v243_v11 = vadd.f32 1e-06, %v242_v10  ;;  %v317_v8 = vperm.slane %v773_v4, 0 }
 0x307   :  { %540 = vrcp.f32 %v243_v11  ;;  %v255_v15 = vand.u32 2147483648, %v243_v11  ;;  %v253_v17 = vand.u32 2147483647, %v243_v11  ;;  %vm249_vm13 = vweird.f32 %v243_v11 }
 0x309   :  { %v256_v19 = vor.u32 1.1754944e-38, %v255_v15  ;;  %vm254_vm15 = vcmp.eq.f32.partialorder %v253_v17, 8.507059e+37  ;;  %v417_v17 = vld [vmem:[%s824_s10] sm:$0xf]  ;;  %s642_s10 = smov [#allocation7]  }
 0x30d   :  { %v541_v12 = vpop.eup %540 }
 0x30e   :  { %v245_v13 = vmul.f32 %v541_v12, %v243_v11  ;;  %vm250_vm12 = vweird.f32 %v541_v12 }
 0x30f   :  { %vm251_vm14 = vmor %vm249_vm13, %vm250_vm12 }
 0x310   :  { %v246_v14 = vsub.f32 1.0, %v245_v13  ;;  %v339_v13 = vld [vmem:[%s823_s9] sm:$0xf] }
 0x312   :  { %v247_v16 = vmul.f32 %v541_v12, %v246_v14 }
 0x314   :  { %v248_v18 = vadd.f32 %v541_v12, %v247_v16  ;;  %v425_v16 = vld [vmem:[%s825_s11] sm:$0xf]  ;;  %s489_s11 = sshll.u32 %s642_s10, 4  ;;  %s490_s11 = int_to_ptr.vmem [resolvable:$true] %s489_s11 }
 0x316   :  { %v252_v20 = vsel %vm251_vm14, %v541_v12, %v248_v18 }
 0x317   :  { %v257_v21 = vsel %vm254_vm15, %v256_v19, %v252_v20  ;;  %vm477_vm15 = vcmask 125952  }
 0x318   :  { %v259_v23 = vmul.f32 %v257_v21, %v214_v51 }
 0x31a   :  { %v265_v27 = vmul.f32 %v263_v22, %v259_v23  ;;  %v319_v23 = vld [vmem:[%s822_s8] sm:$0xf]  ;;  %s641_s8 = smov 112  }
 0x31c   :  { %v272_v28 = vadd.f32 %v270_v25, %v265_v27 }
 0x31e   :  { %v274_v29 = vmul.f32 0.70710677, %v272_v28  ;;  %v273_v6 = vmul.f32 0.5, %v272_v28 }
 0x320   :  { %v275_v30 = vmul.f32 %v274_v29, %v274_v29 }
 0x322   :  { %v276_v31 = vmin.f32 %v275_v30, 16.0 }
 0x324   :  { %v277_v32 = vmul.f32 2.1237322e-06, %v276_v31  ;;  %v288_v33 = vmul.f32 3.8918573e-05, %v276_v31 }
 0x326   :  { %v278_v34 = vadd.f32 0.00028619796, %v277_v32  ;;  %v289_v35 = vadd.f32 0.001143296, %v288_v33 }
 0x328   :  { %v279_v36 = vmul.f32 %v278_v34, %v276_v31  ;;  %v290_v37 = vmul.f32 %v289_v35, %v276_v31 }
 0x32a   :  { %v291_v38 = vadd.f32 0.014752088, %v290_v37  ;;  %v280_v39 = vadd.f32 0.0036580483, %v279_v36 }
 0x32c   :  { %v292_v40 = vmul.f32 %v291_v38, %v276_v31  ;;  %v281_v42 = vmul.f32 %v280_v39, %v276_v31 }
 0x32e   :  { %v293_v41 = vadd.f32 0.112945676, %v292_v40  ;;  %v282_v45 = vadd.f32 0.05243302, %v281_v42 }
 0x330   :  { %v294_v43 = vmul.f32 %v293_v41, %v276_v31  ;;  %v283_v49 = vmul.f32 %v282_v45, %v276_v31 }
 0x332   :  { %v295_v44 = vadd.f32 0.4994258, %v294_v43  ;;  %v284_v50 = vadd.f32 0.18741608, %v283_v49 }
 0x334   :  { %v296_v46 = vmul.f32 %v295_v44, %v276_v31  ;;  %v285_v52 = vmul.f32 %v284_v50, %v276_v31 }
 0x336   :  { %v297_v48 = vadd.f32 1.0, %v296_v46  ;;  %v286_v56 = vadd.f32 1.1283791, %v285_v52 }
 0x338   :  { %542 = vrcp.f32 %v297_v48  ;;  %v309_v55 = vand.u32 2147483648, %v297_v48  ;;  %v307_v58 = vand.u32 2147483647, %v297_v48  ;;  %vm303_vm6 = vweird.f32 %v297_v48 }
 0x339   :  { %v287_v61 = vmul.f32 %v286_v56, %v274_v29 }
 0x33a   :  { %v310_v60 = vor.u32 1.1754944e-38, %v309_v55  ;;  %vm308_vm9 = vcmp.eq.f32.partialorder %v307_v58, 8.507059e+37 }
 0x33e   :  { %v543_v51 = vpop.eup %542 }
 0x33f   :  { %v299_v53 = vmul.f32 %v543_v51, %v297_v48  ;;  %vm304_vm0 = vweird.f32 %v543_v51 }
 0x340   :  { %vm305_vm8 = vmor %vm303_vm6, %vm304_vm0 }
 0x341   :  { %v300_v54 = vsub.f32 1.0, %v299_v53 }
 0x343   :  { %v301_v57 = vmul.f32 %v543_v51, %v300_v54 }
 0x345   :  { %v302_v59 = vadd.f32 %v543_v51, %v301_v57 }
 0x347   :  { %v306_v63 = vsel %vm305_vm8, %v543_v51, %v302_v59 }
 0x348   :  { %v311_v2 = vsel %vm308_vm9, %v310_v60, %v306_v63 }
 0x349   :  { %v312_v3 = vmul.f32 %v311_v2, %v287_v61 }
 0x34b   :  { %v511_v5 = vclamps-f32 %v312_v3, 1.0 }
 0x34d   :  { %v315_v7 = vadd.f32 1.0, %v511_v5 }
 0x34f   :  { %v316_v9 = vmul.f32 %v315_v7, %v273_v6 }
 0x351   :  { %v318_v10 = vmul.f32 %v317_v8, %v316_v9 }
 0x353   :  { %320 = vrot.lane.b32.xlu2 %v318_v10, %s635_s20  ;;  %v336_v22 = vrot.slane %v318_v10, 4 }
 0x3ad   :  { %v321_v11 = vpop.permute.xlu2 %320 }
 0x3ae   :  { %v322_v12 = vsel %vm148_vm3, %v321_v11, %v318_v10 }
 0x3af   :  { %323 = vrot.lane.b32.xlu0 %v322_v12, %s635_s20  ;;  %s491_s20 = sshll.u32 %s826_s12, 4  ;;  %s492_s20 = int_to_ptr.hbm [resolvable:$true] %s491_s20 }
 0x3b7   :  { %342 = vperm.xlu0 %530, %v339_v13  }
 0x421   :  { %v324_v14 = vpop.permute.xlu0 %323 }
 0x422   :  { %v325_v15 = vsel %vm148_vm3, %v324_v14, %v318_v10 }
 0x423   :  { %327 = vrot.lane.b32.xlu2 %v325_v15, %s637_s21  ;;  %331 = vrot.lane.b32.xlu1 %v325_v15, %s636_s0 }
 0x429   :  { %v343_v27 = vpop.permute.xlu0 %342 }
 0x42b   :  { %428 = vperm.xlu2 %532, %v425_v16   ;;  %421 = vperm.xlu1 %531, %v417_v17  }
 0x47d   :  { %v328_v18 = vpop.permute.xlu2 %327 }
 0x47e   :  { %v330_v19 = vsel %vm748_vm5, %v328_v18, 0.0 }
 0x47f   :  { %v338_v25 = vsel %vm129_vm2, %v330_v19, %v336_v22 }
 0x485   :  { %v429_v7 = vpop.permute.xlu2 %428 }
 0x495   :  { %v332_v20 = vpop.permute.xlu1 %331 }
 0x496   :  { %v334_v21 = vsel %vm742_vm4, %v332_v20, 0.0 }
 0x497   :  { %512 = vmatpush.msk.msra.mxu2 %vm129_vm2, %v334_v21 }
 0x499   :  { %367 = vmatpush.msra.mxu2 %v338_v25 }
 0x49a   :  { %513 = vmatmul.msk.f32.vlgmr.msra.gmra.mxu2 %vm345_vm1, %v319_v23 }
 0x49d   :  { %v422_v5 = vpop.permute.xlu1 %421 }
 0x51d   :  { %v369_v28 = vpop.f32.mrf.mxu2 }
 0x51e   :  { %v370_v26 = vadd.f32 %v369_v28, %v343_v27 }
 0x520   :  { %v372_v29 = vsel %vm198_vm7, %v370_v26, 0.0 }
 0x521   :  { %v373_v30 = vrot.slane %v372_v29, 4 }
 0x523   :  { %v374_v24 = vadd.f32 %v373_v30, %v372_v29 }
 0x525   :  { %v375_v31 = vrot.slane %v374_v24, 2 }
 0x527   :  { %v376_v32 = vadd.f32 %v375_v31, %v374_v24 }
 0x529   :  { %v377_v33 = vrot.slane %v376_v32, 1 }
 0x52b   :  { %v378_v34 = vadd.f32 %v377_v33, %v376_v32 }
 0x52d   :  { %v379_v35 = vmul.f32 %v378_v34, %v762_v47 }
 0x52f   :  { %v380_v36 = vsub.f32 %v370_v26, %v379_v35 }
 0x531   :  { %v381_v37 = vmul.f32 %v380_v36, %v380_v36 }
 0x533   :  { %v382_v38 = vsel %vm198_vm7, %v381_v37, 0.0 }
 0x534   :  { %v383_v39 = vrot.slane %v382_v38, 4 }
 0x536   :  { %v384_v40 = vadd.f32 %v383_v39, %v382_v38 }
 0x538   :  { %v385_v41 = vrot.slane %v384_v40, 2 }
 0x53a   :  { %v386_v42 = vadd.f32 %v385_v41, %v384_v40 }
 0x53c   :  { %v387_v43 = vrot.slane %v386_v42, 1 }
 0x53e   :  { %v388_v44 = vadd.f32 %v387_v43, %v386_v42 }
 0x540   :  { %v389_v45 = vmul.f32 %v388_v44, %v766_v62 }
 0x542   :  { %544 = vrsqrt.f32 %v389_v45  ;;  %vm397_vm2 = vcmp.eq.f32.partialorder %v389_v45, inf  ;;  %v400_v53 = vand.u32 2147483648, %v389_v45  ;;  %vm399_vm3 = vcmp.eq.f32.partialorder %v389_v45, 0.0 }
 0x548   :  { %v545_v46 = vpop.eup %544 }
 0x549   :  { %v391_v48 = vmul.f32 %v545_v46, %v389_v45 }
 0x54b   :  { %v392_v49 = vmul.f32 %v545_v46, %v391_v48 }
 0x54d   :  { %v393_v50 = vmul.f32 0.5, %v392_v49 }
 0x54f   :  { %v394_v51 = vsub.f32 1.5, %v393_v50 }
 0x551   :  { %v395_v52 = vmul.f32 %v545_v46, %v394_v51 }
 0x553   :  { %v396_v47 = vmul.f32 %v395_v52, %v389_v45 }
 0x555   :  { %v398_v54 = vsel %vm397_vm2, %v389_v45, %v396_v47 }
 0x556   :  { %v401_v55 = vsel %vm399_vm3, %v400_v53, %v398_v54 }
 0x557   :  { %v402_v56 = vadd.f32 1e-06, %v401_v55 }
 0x559   :  { %546 = vrcp.f32 %v402_v56  ;;  %v414_v60 = vand.u32 2147483648, %v402_v56  ;;  %v412_v61 = vand.u32 2147483647, %v402_v56  ;;  %vm408_vm5 = vweird.f32 %v402_v56 }
 0x55b   :  { %v415_v0 = vor.u32 1.1754944e-38, %v414_v60  ;;  %vm413_vm10 = vcmp.eq.f32.partialorder %v412_v61, 8.507059e+37 }
 0x55f   :  { %v547_v57 = vpop.eup %546 }
 0x560   :  { %v404_v58 = vmul.f32 %v547_v57, %v402_v56  ;;  %vm409_vm4 = vweird.f32 %v547_v57 }
 0x561   :  { %vm410_vm7 = vmor %vm408_vm5, %vm409_vm4 }
 0x562   :  { %v405_v59 = vsub.f32 1.0, %v404_v58 }
 0x564   :  { %v406_v62 = vmul.f32 %v547_v57, %v405_v59 }
 0x566   :  { %v407_v63 = vadd.f32 %v547_v57, %v406_v62 }
 0x568   :  { %v411_v1 = vsel %vm410_vm7, %v547_v57, %v407_v63 }
 0x569   :  { %v416_v2 = vsel %vm413_vm10, %v415_v0, %v411_v1 }
 0x56a   :  { %v418_v3 = vmul.f32 %v416_v2, %v380_v36 }
 0x56c   :  { %v424_v6 = vmul.f32 %v422_v5, %v418_v3 }
 0x56e   :  { %v431_v9 = vadd.f32 %v429_v7, %v424_v6 }
 0x570   :  { %v433_v10 = vmul.f32 0.70710677, %v431_v9  ;;  %v432_v46 = vmul.f32 0.5, %v431_v9 }
 0x572   :  { %v434_v11 = vmul.f32 %v433_v10, %v433_v10 }
 0x574   :  { %v435_v12 = vmin.f32 %v434_v11, 16.0 }
 0x576   :  { %v436_v13 = vmul.f32 2.1237322e-06, %v435_v12  ;;  %v447_v14 = vmul.f32 3.8918573e-05, %v435_v12 }
 0x578   :  { %v437_v15 = vadd.f32 0.00028619796, %v436_v13  ;;  %v448_v16 = vadd.f32 0.001143296, %v447_v14 }
 0x57a   :  { %v438_v17 = vmul.f32 %v437_v15, %v435_v12  ;;  %v449_v18 = vmul.f32 %v448_v16, %v435_v12 }
 0x57c   :  { %v450_v19 = vadd.f32 0.014752088, %v449_v18  ;;  %v439_v20 = vadd.f32 0.0036580483, %v438_v17 }
 0x57e   :  { %v451_v21 = vmul.f32 %v450_v19, %v435_v12  ;;  %v440_v23 = vmul.f32 %v439_v20, %v435_v12 }
 0x580   :  { %v452_v22 = vadd.f32 0.112945676, %v451_v21  ;;  %v441_v28 = vadd.f32 0.05243302, %v440_v23 }
 0x582   :  { %v453_v25 = vmul.f32 %v452_v22, %v435_v12  ;;  %v442_v30 = vmul.f32 %v441_v28, %v435_v12 }
 0x584   :  { %v454_v27 = vadd.f32 0.4994258, %v453_v25  ;;  %v443_v24 = vadd.f32 0.18741608, %v442_v30 }
 0x586   :  { %v455_v26 = vmul.f32 %v454_v27, %v435_v12  ;;  %v444_v32 = vmul.f32 %v443_v24, %v435_v12 }
 0x588   :  { %v456_v29 = vadd.f32 1.0, %v455_v26  ;;  %v445_v36 = vadd.f32 1.1283791, %v444_v32 }
 0x58a   :  { %548 = vrcp.f32 %v456_v29  ;;  %v468_v35 = vand.u32 2147483648, %v456_v29  ;;  %v466_v38 = vand.u32 2147483647, %v456_v29  ;;  %vm462_vm12 = vweird.f32 %v456_v29 }
 0x58b   :  { %v446_v41 = vmul.f32 %v445_v36, %v433_v10 }
 0x58c   :  { %v469_v40 = vor.u32 1.1754944e-38, %v468_v35  ;;  %vm467_vm14 = vcmp.eq.f32.partialorder %v466_v38, 8.507059e+37 }
 0x590   :  { %v549_v31 = vpop.eup %548 }
 0x591   :  { %v458_v33 = vmul.f32 %v549_v31, %v456_v29  ;;  %vm463_vm11 = vweird.f32 %v549_v31 }
 0x592   :  { %vm464_vm13 = vmor %vm462_vm12, %vm463_vm11 }
 0x593   :  { %v459_v34 = vsub.f32 1.0, %v458_v33 }
 0x595   :  { %v460_v37 = vmul.f32 %v549_v31, %v459_v34 }
 0x597   :  { %v461_v39 = vadd.f32 %v549_v31, %v460_v37 }
 0x599   :  { %v465_v42 = vsel %vm464_vm13, %v549_v31, %v461_v39 }
 0x59a   :  { %v470_v43 = vsel %vm467_vm14, %v469_v40, %v465_v42 }
 0x59b   :  { %v471_v44 = vmul.f32 %v470_v43, %v446_v41 }
 0x59d   :  { %v514_v45 = vclamps-f32 %v471_v44, 1.0 }
 0x59f   :  { %v474_v48 = vadd.f32 1.0, %v514_v45 }
 0x5a1   :  { %v475_v49 = vmul.f32 %v474_v48, %v432_v46 }
 0x5a3   :  { %v476_v50 = vmul.f32 %v475_v49, %v317_v8 }
 0x5a5   :  { %480 = vrot.lane.b32.xlu0 %v476_v50, %s641_s8  ;;  %478 = vst.msk [vmem:[#allocation7] sm:$0xf] %vm477_vm15, %v476_v50 }
 0x617   :  { %v481_v51 = vpop.permute.xlu0 %480 }
 0x618   :  { %484 = vst.msk [vmem:[#allocation7 + $0x4] sm:$0xf] %vm477_vm15, %v481_v51 }
 0x619   :  { %497 = dma.vmem_to_hbm [thread:$0]  %s490_s11, 128, %s492_s20, [#allocation4], %s629_s29, %s629_s29, %s630_s30  }
 0x61a   :  { %626 = dma.done.wait [#allocation4], 128  }
 0x61b   :  { %627 = vsyncadd [#allocation4], 4294967168 }
 0x61c   :  { %502 = vsyncpa [#allocation3], 1 }
 0x61d   :  { %503 = vsyncpa [#allocation6], 1 }
 0x61e   :  { %504 = vsyncpa [#allocation4], 1 }

</bundles_post_ra>
